<compile_context>
chip_gen: v7x
topology: tpu7x:2x2x1
jax: 0.10.0
libtpu: 0.0.40
codegen_flags: <defaults>
</compile_context>

<pallas_src>
import jax
import jax.numpy as jnp
import numpy as np
from jax import lax
from jax.experimental import pallas as pl
from jax.experimental.pallas import tpu as pltpu

IGNORE_ID = -1
DUR_OFFSET = 1.0
_NEG = -1e9  # fill value for vocab / time padding of logits


def _round_up(x, m):
    return (x + m - 1) // m * m


def _fused_loss_kernel(olens_ref, ilens_ref, before_ref, after_ref, ys_ref,
                       d_ref, ds_ref, p_ref, ps_ref, e_ref, es_ref,
                       out_ref,
                       ceb_acc, cea_acc, corb_acc, cora_acc, mcnt_acc, vcnt_acc):
    b = pl.program_id(0)
    t = pl.program_id(1)
    is_first = jnp.logical_and(b == 0, t == 0)
    is_last = jnp.logical_and(b == pl.num_programs(0) - 1,
                              t == pl.num_programs(1) - 1)

    TT, Vp = before_ref.shape  # time-tile rows (sublanes), padded vocab (lanes)

    @pl.when(is_first)
    def _init_and_regression():
        ceb_acc[...] = jnp.zeros_like(ceb_acc)
        cea_acc[...] = jnp.zeros_like(cea_acc)
        corb_acc[...] = jnp.zeros_like(corb_acc)
        cora_acc[...] = jnp.zeros_like(cora_acc)
        mcnt_acc[...] = jnp.zeros_like(mcnt_acc)
        vcnt_acc[...] = jnp.zeros_like(vcnt_acc)

        # duration / pitch / energy losses: (B, T_text) is sub-vreg scale, do once.
        ilens = ilens_ref[...]                                   # (B, 1) int32
        d = d_ref[...]
        ds = ds_ref[...]
        p = p_ref[...]
        ps = ps_ref[...]
        e = e_ref[...]
        es = es_ref[...]
        Bq, Tt = d.shape
        ti = lax.broadcasted_iota(jnp.int32, (Bq, Tt), 1)
        tm = (ti < ilens).astype(jnp.float32)                    # text non-pad mask
        inv_cnt = 1.0 / jnp.sum(tm, keepdims=True)               # (1, 1)
        dur_tgt = jnp.log(ds + DUR_OFFSET)                       # DurationPredictorLoss
        out_ref[0:1, 1:2] = jnp.sum(tm * (d - dur_tgt) ** 2, keepdims=True) * inv_cnt
        out_ref[0:1, 2:3] = jnp.sum(tm * (p - ps) ** 2, keepdims=True) * inv_cnt
        out_ref[0:1, 3:4] = jnp.sum(tm * (e - es) ** 2, keepdims=True) * inv_cnt
        out_ref[0:1, 6:8] = jnp.zeros((1, 2), jnp.float32)       # unused slots, keep clean

    # ---- masked CE + accuracy counts for this (batch, time-tile) block -------------
    olen = olens_ref[b]                                          # SMEM scalar
    ys_t = ys_ref[...]                                           # (TT, 1) int32
    row = lax.broadcasted_iota(jnp.int32, (TT, 1), 0) + t * TT
    mask = row < olen                                            # length (non-pad) mask
    valid = jnp.logical_and(mask, ys_t != IGNORE_ID)             # CE ignore_index mask

    v_idx = lax.broadcasted_iota(jnp.int32, (1, Vp), 1)          # lane-only iota
    onehot = v_idx == ys_t                                       # (TT, Vp) via broadcast

    def _ce_and_correct(logits_ref):
        x = logits_ref[...].astype(jnp.float32)                  # (TT, Vp)
        m = jnp.max(x, axis=-1, keepdims=True)                   # (TT, 1)
        lse = jnp.log(jnp.sum(jnp.exp(x - m), axis=-1, keepdims=True)) + m
        picked = jnp.sum(jnp.where(onehot, x, 0.0), axis=-1, keepdims=True)  # x[ys]
        ce = jnp.sum(jnp.where(valid, lse - picked, 0.0), keepdims=True)     # (1, 1)
        # argmax(x) == ys  <=>  x[ys] == max(x)  (float-tie behavior differs from
        # torch.argmax's first-index rule only on measure-zero exact ties).
        hit = jnp.logical_and(picked >= m, jnp.logical_and(mask, ys_t >= 0))
        corr = jnp.sum(hit.astype(jnp.float32), keepdims=True)               # (1, 1)
        return ce, corr

    ce_b, corr_b = _ce_and_correct(before_ref)
    ce_a, corr_a = _ce_and_correct(after_ref)
    ceb_acc[...] += ce_b
    cea_acc[...] += ce_a
    corb_acc[...] += corr_b
    cora_acc[...] += corr_a
    mcnt_acc[...] += jnp.sum(mask.astype(jnp.float32), keepdims=True)
    vcnt_acc[...] += jnp.sum(valid.astype(jnp.float32), keepdims=True)

    @pl.when(is_last)
    def _finalize():
        inv_v = 1.0 / vcnt_acc[...]
        inv_m = 1.0 / mcnt_acc[...]
        out_ref[0:1, 0:1] = (ceb_acc[...] + cea_acc[...]) * inv_v   # ce_loss
        out_ref[0:1, 4:5] = corb_acc[...] * inv_m                   # before_acc
        out_ref[0:1, 5:6] = cora_acc[...] * inv_m                   # after_acc


@jax.jit
def fastspeech2_loss_discrete(after_outs, before_outs, d_outs, p_outs, e_outs,
                              ys, ds, ps, es, ilens, olens):
    """use_masking=True, use_weighted_masking=False, ignore_id=-1."""
    B, T, V = before_outs.shape
    Tt = d_outs.shape[-1]
    itemsize = jnp.dtype(before_outs.dtype).itemsize

    # Lane-dense vocab.
    Vp = _round_up(V, 128)

    # Time-tile: multiple of 8 rows; keep 2 logits sets x 2 pipeline buffers (HBM
    # dtype) plus in-kernel f32 working tiles comfortably inside scoped VMEM on every
    # gen (16 MiB v5e, 32 MiB v6e/v7x; v7x only has 64 MiB physical).
    per_row_bytes = Vp * (2 * 2 * itemsize + 2 * 4)
    tt = min(512, max(8, (8 * 1024 * 1024) // per_row_bytes))
    tt = (tt // 8) * 8
    if T <= tt:
        tt = _round_up(T, 8)
    T_pad = _round_up(T, tt)

    def pad_logits(x):
        if T_pad == T and Vp == V:
            return x                        # aligned: no extra HBM copy
        return jnp.pad(x, ((0, 0), (0, T_pad - T), (0, Vp - V)),
                       constant_values=_NEG)

    before_p = pad_logits(before_outs)
    after_p = pad_logits(after_outs)
    ys_i = ys.astype(jnp.int32)
    if T_pad != T:
        ys_i = jnp.pad(ys_i, ((0, 0), (0, T_pad - T)), constant_values=IGNORE_ID)
    ys_p = ys_i[..., None]                                          # (B, T_pad, 1)

    olens_i = olens.astype(jnp.int32)                               # (B,)  -> SMEM
    ilens_c = ilens.astype(jnp.int32).reshape(B, 1)                 # (B,1) -> VMEM

    d_f = d_outs.astype(jnp.float32)
    ds_f = ds.astype(jnp.float32)
    p_f = p_outs.reshape(B, Tt).astype(jnp.float32)
    ps_f = ps.reshape(B, Tt).astype(jnp.float32)
    e_f = e_outs.reshape(B, Tt).astype(jnp.float32)
    es_f = es.reshape(B, Tt).astype(jnp.float32)

    grid = (B, T_pad // tt)

    def full2d(shape):
        # Same block index every grid step -> fetched once, stays VMEM-resident.
        return pl.BlockSpec(shape, lambda b, t: (0, 0))

    out = pl.pallas_call(
        _fused_loss_kernel,
        out_shape=jax.ShapeDtypeStruct((1, 8), jnp.float32),
        grid=grid,
        in_specs=[
            pl.BlockSpec(memory_space=pltpu.MemorySpace.SMEM),        # olens
            full2d((B, 1)),                                           # ilens
            pl.BlockSpec((None, tt, Vp), lambda b, t: (b, t, 0)),     # before_outs
            pl.BlockSpec((None, tt, Vp), lambda b, t: (b, t, 0)),     # after_outs
            pl.BlockSpec((None, tt, 1), lambda b, t: (b, t, 0)),      # ys
            full2d((B, Tt)),                                          # d_outs
            full2d((B, Tt)),                                          # ds
            full2d((B, Tt)),                                          # p_outs
            full2d((B, Tt)),                                          # ps
            full2d((B, Tt)),                                          # e_outs
            full2d((B, Tt)),                                          # es
        ],
        out_specs=pl.BlockSpec((1, 8), lambda b, t: (0, 0)),
        scratch_shapes=[pltpu.VMEM((1, 1), jnp.float32) for _ in range(6)],
        compiler_params=pltpu.CompilerParams(
            # Both axes feed the shared scalar accumulators -> reduction ("arbitrary").
            dimension_semantics=("arbitrary", "arbitrary"),
            vmem_limit_bytes=32 * 1024 * 1024),
    )(olens_i, ilens_c, before_p, after_p, ys_p,
      d_f, ds_f, p_f, ps_f, e_f, es_f)

    r = out[0]
    # TODO(synk): use_weighted_masking=True branch (per-sample weighted sums) not implemented.
    return r[0], r[1], r[2], r[3], r[4], r[5]


def _reference(after_outs, before_outs, d_outs, p_outs, e_outs,
               ys, ds, ps, es, ilens, olens):
    """Pure-JAX reference matching the PyTorch module (default flags)."""
    B, T, V = before_outs.shape
    om = jnp.arange(T)[None, :] < olens[:, None]
    valid = om & (ys != IGNORE_ID)

    def ce_acc(logits):
        logp = jax.nn.log_softmax(logits.astype(jnp.float32), axis=-1)
        picked = jnp.take_along_axis(
            logp, jnp.clip(ys, 0, V - 1)[..., None], axis=-1)[..., 0]
        ce = -jnp.sum(jnp.where(valid, picked, 0.0)) / jnp.sum(valid)
        acc = jnp.sum((jnp.argmax(logits, -1) == ys) & om) / jnp.sum(om)
        return ce, acc

    ce_b, acc_b = ce_acc(before_outs)
    ce_a, acc_a = ce_acc(after_outs)

    Tt = d_outs.shape[-1]
    im = (jnp.arange(Tt)[None, :] < ilens[:, None]).astype(jnp.float32)
    cnt = jnp.sum(im)
    dur = jnp.sum(im * (d_outs - jnp.log(ds.astype(jnp.float32) + DUR_OFFSET)) ** 2) / cnt
    pit = jnp.sum(im * (p_outs[..., 0] - ps[..., 0]) ** 2) / cnt
    en = jnp.sum(im * (e_outs[..., 0] - es[..., 0]) ** 2) / cnt
    return ce_b + ce_a, dur, pit, en, acc_b, acc_a


if __name__ == "__main__":
    key = jax.random.PRNGKey(0)
    B, T_feats, V, T_text = 2, 16, 32, 8
    ks = jax.random.split(key, 10)

    before_outs = jax.random.normal(ks[0], (B, T_feats, V), jnp.float32)
    after_outs = jax.random.normal(ks[1], (B, T_feats, V), jnp.float32)
    olens = jnp.array([16, 12], jnp.int32)
    ilens = jnp.array([8, 6], jnp.int32)

    ys = jax.random.randint(ks[2], (B, T_feats), 0, V, jnp.int32)
    feat_pad = jnp.arange(T_feats)[None, :] >= olens[:, None]
    ys = jnp.where(feat_pad, IGNORE_ID, ys)                      # padded targets = -1

    d_outs = jax.random.normal(ks[3], (B, T_text), jnp.float32)
    ds = jax.random.randint(ks[4], (B, T_text), 1, 6, jnp.int32)
    p_outs = jax.random.normal(ks[5], (B, T_text, 1), jnp.float32)
    ps = jax.random.normal(ks[6], (B, T_text, 1), jnp.float32)
    e_outs = jax.random.normal(ks[7], (B, T_text, 1), jnp.float32)
    es = jax.random.normal(ks[8], (B, T_text, 1), jnp.float32)

    outs = fastspeech2_loss_discrete(after_outs, before_outs, d_outs, p_outs, e_outs,
                                     ys, ds, ps, es, ilens, olens)
    outs = jax.block_until_ready(outs)

    refs = _reference(after_outs, before_outs, d_outs, p_outs, e_outs,
                      ys, ds, ps, es, ilens, olens)
    for got, want in zip(outs, refs):
        np.testing.assert_allclose(np.asarray(got), np.asarray(want),
                                   rtol=1e-4, atol=1e-4)
    assert all(bool(jnp.isfinite(x)) for x in outs)
    print("KERNEL_OK")
</pallas_src>

<mosaic_0001>
module attributes {stable_mosaic.version = 11 : i64} {
  func.func @_fused_loss_kernel(%arg0: i32, %arg1: i32, %arg2: memref<2xi32, #tpu.memory_space<smem>>, %arg3: memref<2x1xi32, #tpu.memory_space<vmem>>, %arg4: memref<1x16x128xf32, #tpu.memory_space<vmem>>, %arg5: memref<1x16x128xf32, #tpu.memory_space<vmem>>, %arg6: memref<1x16x1xi32, #tpu.memory_space<vmem>>, %arg7: memref<2x8xf32, #tpu.memory_space<vmem>>, %arg8: memref<2x8xf32, #tpu.memory_space<vmem>>, %arg9: memref<2x8xf32, #tpu.memory_space<vmem>>, %arg10: memref<2x8xf32, #tpu.memory_space<vmem>>, %arg11: memref<2x8xf32, #tpu.memory_space<vmem>>, %arg12: memref<2x8xf32, #tpu.memory_space<vmem>>, %arg13: memref<1x8xf32, #tpu.memory_space<vmem>>, %arg14: memref<1x1xf32, #tpu.memory_space<vmem>>, %arg15: memref<1x1xf32, #tpu.memory_space<vmem>>, %arg16: memref<1x1xf32, #tpu.memory_space<vmem>>, %arg17: memref<1x1xf32, #tpu.memory_space<vmem>>, %arg18: memref<1x1xf32, #tpu.memory_space<vmem>>, %arg19: memref<1x1xf32, #tpu.memory_space<vmem>>) attributes {dimension_semantics = [#tpu.dimension_semantics<arbitrary>, #tpu.dimension_semantics<arbitrary>], iteration_bounds = array<i64: 2, 1>, scalar_prefetch = 0 : i64, scratch_operands = 6 : i64, tpu.core_type = #tpu.core_type<tc>, window_params = [{transform_indices = @transform_0, window_bounds = array<i64: 2>}, {pipeline_mode = #tpu.pipeline_mode<synchronous>, transform_indices = @transform_1, window_bounds = array<i64: 2, 1>}, {transform_indices = @transform_2, window_bounds = array<i64: 1, 16, 128>}, {transform_indices = @transform_3, window_bounds = array<i64: 1, 16, 128>}, {transform_indices = @transform_4, window_bounds = array<i64: 1, 16, 1>}, {pipeline_mode = #tpu.pipeline_mode<synchronous>, transform_indices = @transform_5, window_bounds = array<i64: 2, 8>}, {pipeline_mode = #tpu.pipeline_mode<synchronous>, transform_indices = @transform_6, window_bounds = array<i64: 2, 8>}, {pipeline_mode = #tpu.pipeline_mode<synchronous>, transform_indices = @transform_7, window_bounds = array<i64: 2, 8>}, {pipeline_mode = #tpu.pipeline_mode<synchronous>, transform_indices = @transform_8, window_bounds = array<i64: 2, 8>}, {pipeline_mode = #tpu.pipeline_mode<synchronous>, transform_indices = @transform_9, window_bounds = array<i64: 2, 8>}, {pipeline_mode = #tpu.pipeline_mode<synchronous>, transform_indices = @transform_10, window_bounds = array<i64: 2, 8>}, {pipeline_mode = #tpu.pipeline_mode<synchronous>, transform_indices = @transform_11, window_bounds = array<i64: 1, 8>}]} {
    %c0_i32 = arith.constant 0 : i32
    %0 = arith.cmpi eq, %arg0, %c0_i32 : i32
    %c0_i32_0 = arith.constant 0 : i32
    %1 = arith.cmpi eq, %arg1, %c0_i32_0 : i32
    %2 = arith.andi %0, %1 : i1
    %c1_i32 = arith.constant 1 : i32
    %3 = arith.cmpi eq, %arg0, %c1_i32 : i32
    %c0_i32_1 = arith.constant 0 : i32
    %4 = arith.cmpi eq, %arg1, %c0_i32_1 : i32
    %5 = arith.andi %3, %4 : i1
    %6 = arith.extui %2 : i1 to i32
    %c0_i32_2 = arith.constant 0 : i32
    %7 = arith.cmpi ne, %6, %c0_i32_2 : i32
    scf.if %7 {
      %cst_53 = arith.constant 0.000000e+00 : f32
      %129 = vector.broadcast %cst_53 : f32 to vector<1x1xf32>
      %c0_54 = arith.constant 0 : index
      %c0_55 = arith.constant 0 : index
      %130 = vector.load %arg14[%c0_54, %c0_55] : memref<1x1xf32, #tpu.memory_space<vmem>>, vector<1x1xf32>
      tpu.vector_store %arg14[%c0_54, %c0_55], %129 {strides = array<i32>} : memref<1x1xf32, #tpu.memory_space<vmem>>, vector<1x1xf32>,
      %cst_56 = arith.constant 0.000000e+00 : f32
      %131 = vector.broadcast %cst_56 : f32 to vector<1x1xf32>
      %c0_57 = arith.constant 0 : index
      %c0_58 = arith.constant 0 : index
      %132 = vector.load %arg15[%c0_57, %c0_58] : memref<1x1xf32, #tpu.memory_space<vmem>>, vector<1x1xf32>
      tpu.vector_store %arg15[%c0_57, %c0_58], %131 {strides = array<i32>} : memref<1x1xf32, #tpu.memory_space<vmem>>, vector<1x1xf32>,
      %cst_59 = arith.constant 0.000000e+00 : f32
      %133 = vector.broadcast %cst_59 : f32 to vector<1x1xf32>
      %c0_60 = arith.constant 0 : index
      %c0_61 = arith.constant 0 : index
      %134 = vector.load %arg16[%c0_60, %c0_61] : memref<1x1xf32, #tpu.memory_space<vmem>>, vector<1x1xf32>
      tpu.vector_store %arg16[%c0_60, %c0_61], %133 {strides = array<i32>} : memref<1x1xf32, #tpu.memory_space<vmem>>, vector<1x1xf32>,
      %cst_62 = arith.constant 0.000000e+00 : f32
      %135 = vector.broadcast %cst_62 : f32 to vector<1x1xf32>
      %c0_63 = arith.constant 0 : index
      %c0_64 = arith.constant 0 : index
      %136 = vector.load %arg17[%c0_63, %c0_64] : memref<1x1xf32, #tpu.memory_space<vmem>>, vector<1x1xf32>
      tpu.vector_store %arg17[%c0_63, %c0_64], %135 {strides = array<i32>} : memref<1x1xf32, #tpu.memory_space<vmem>>, vector<1x1xf32>,
      %cst_65 = arith.constant 0.000000e+00 : f32
      %137 = vector.broadcast %cst_65 : f32 to vector<1x1xf32>
      %c0_66 = arith.constant 0 : index
      %c0_67 = arith.constant 0 : index
      %138 = vector.load %arg18[%c0_66, %c0_67] : memref<1x1xf32, #tpu.memory_space<vmem>>, vector<1x1xf32>
      tpu.vector_store %arg18[%c0_66, %c0_67], %137 {strides = array<i32>} : memref<1x1xf32, #tpu.memory_space<vmem>>, vector<1x1xf32>,
      %cst_68 = arith.constant 0.000000e+00 : f32
      %139 = vector.broadcast %cst_68 : f32 to vector<1x1xf32>
      %c0_69 = arith.constant 0 : index
      %c0_70 = arith.constant 0 : index
      %140 = vector.load %arg19[%c0_69, %c0_70] : memref<1x1xf32, #tpu.memory_space<vmem>>, vector<1x1xf32>
      tpu.vector_store %arg19[%c0_69, %c0_70], %139 {strides = array<i32>} : memref<1x1xf32, #tpu.memory_space<vmem>>, vector<1x1xf32>,
      %c0_71 = arith.constant 0 : index
      %c0_72 = arith.constant 0 : index
      %141 = vector.load %arg3[%c0_71, %c0_72] : memref<2x1xi32, #tpu.memory_space<vmem>>, vector<2x1xi32>
      %c0_73 = arith.constant 0 : index
      %c0_74 = arith.constant 0 : index
      %142 = vector.load %arg7[%c0_73, %c0_74] : memref<2x8xf32, #tpu.memory_space<vmem>>, vector<2x8xf32>
      %c0_75 = arith.constant 0 : index
      %c0_76 = arith.constant 0 : index
      %143 = vector.load %arg8[%c0_75, %c0_76] : memref<2x8xf32, #tpu.memory_space<vmem>>, vector<2x8xf32>
      %c0_77 = arith.constant 0 : index
      %c0_78 = arith.constant 0 : index
      %144 = vector.load %arg9[%c0_77, %c0_78] : memref<2x8xf32, #tpu.memory_space<vmem>>, vector<2x8xf32>
      %c0_79 = arith.constant 0 : index
      %c0_80 = arith.constant 0 : index
      %145 = vector.load %arg10[%c0_79, %c0_80] : memref<2x8xf32, #tpu.memory_space<vmem>>, vector<2x8xf32>
      %c0_81 = arith.constant 0 : index
      %c0_82 = arith.constant 0 : index
      %146 = vector.load %arg11[%c0_81, %c0_82] : memref<2x8xf32, #tpu.memory_space<vmem>>, vector<2x8xf32>
      %c0_83 = arith.constant 0 : index
      %c0_84 = arith.constant 0 : index
      %147 = vector.load %arg12[%c0_83, %c0_84] : memref<2x8xf32, #tpu.memory_space<vmem>>, vector<2x8xf32>
      %148 = tpu.iota {dimensions = array<i32: 1>} : vector<2x8xi32>
      %149 = vector.broadcast %141 : vector<2x1xi32> to vector<2x8xi32>
      %150 = arith.cmpi slt, %148, %149 : vector<2x8xi32>
      %151 = arith.extui %150 : vector<2x8xi1> to vector<2x8xi32>
      %152 = arith.sitofp %151 : vector<2x8xi32> to vector<2x8xf32>
      %153 = vector.shape_cast %152 : vector<2x8xf32> to vector<1x2x8xf32>
      %cst_85 = arith.constant dense<0.000000e+00> : vector<1xf32>
      %154 = vector.multi_reduction <add>, %153, %cst_85 [1, 2] : vector<1x2x8xf32> to vector<1xf32>
      %155 = vector.shape_cast %154 : vector<1xf32> to vector<1x1x1xf32>
      %156 = vector.extract %155[0, 0, 0] : f32 from vector<1x1x1xf32>
      %157 = vector.broadcast %156 : f32 to vector<1x1xf32>
      %cst_86 = arith.constant 1.000000e+00 : f32
      %158 = vector.broadcast %cst_86 : f32 to vector<1x1xf32>
      %159 = arith.divf %158, %157 : vector<1x1xf32>
      %cst_87 = arith.constant 1.000000e+00 : f32
      %160 = vector.broadcast %cst_87 : f32 to vector<2x8xf32>
      %161 = arith.addf %143, %160 : vector<2x8xf32>
      %162 = math.log %161 : vector<2x8xf32>
      %163 = arith.subf %142, %162 : vector<2x8xf32>
      %164 = arith.mulf %163, %163 : vector<2x8xf32>
      %165 = arith.mulf %152, %164 : vector<2x8xf32>
      %166 = vector.shape_cast %165 : vector<2x8xf32> to vector<1x2x8xf32>
      %cst_88 = arith.constant dense<0.000000e+00> : vector<1xf32>
      %167 = vector.multi_reduction <add>, %166, %cst_88 [1, 2] : vector<1x2x8xf32> to vector<1xf32>
      %168 = vector.shape_cast %167 : vector<1xf32> to vector<1x1x1xf32>
      %169 = vector.extract %168[0, 0, 0] : f32 from vector<1x1x1xf32>
      %170 = vector.broadcast %169 : f32 to vector<1x1xf32>
      %171 = arith.mulf %170, %159 : vector<1x1xf32>
      %c0_89 = arith.constant 0 : index
      %c1 = arith.constant 1 : index
      %172 = vector.load %arg13[%c0_89, %c1] : memref<1x8xf32, #tpu.memory_space<vmem>>, vector<1x1xf32>
      tpu.vector_store %arg13[%c0_89, %c1], %171 {strides = array<i32>} : memref<1x8xf32, #tpu.memory_space<vmem>>, vector<1x1xf32>,
      %173 = arith.subf %144, %145 : vector<2x8xf32>
      %174 = arith.mulf %173, %173 : vector<2x8xf32>
      %175 = arith.mulf %152, %174 : vector<2x8xf32>
      %176 = vector.shape_cast %175 : vector<2x8xf32> to vector<1x2x8xf32>
      %cst_90 = arith.constant dense<0.000000e+00> : vector<1xf32>
      %177 = vector.multi_reduction <add>, %176, %cst_90 [1, 2] : vector<1x2x8xf32> to vector<1xf32>
      %178 = vector.shape_cast %177 : vector<1xf32> to vector<1x1x1xf32>
      %179 = vector.extract %178[0, 0, 0] : f32 from vector<1x1x1xf32>
      %180 = vector.broadcast %179 : f32 to vector<1x1xf32>
      %181 = arith.mulf %180, %159 : vector<1x1xf32>
      %c0_91 = arith.constant 0 : index
      %c2 = arith.constant 2 : index
      %182 = vector.load %arg13[%c0_91, %c2] : memref<1x8xf32, #tpu.memory_space<vmem>>, vector<1x1xf32>
      tpu.vector_store %arg13[%c0_91, %c2], %181 {strides = array<i32>} : memref<1x8xf32, #tpu.memory_space<vmem>>, vector<1x1xf32>,
      %183 = arith.subf %146, %147 : vector<2x8xf32>
      %184 = arith.mulf %183, %183 : vector<2x8xf32>
      %185 = arith.mulf %152, %184 : vector<2x8xf32>
      %186 = vector.shape_cast %185 : vector<2x8xf32> to vector<1x2x8xf32>
      %cst_92 = arith.constant dense<0.000000e+00> : vector<1xf32>
      %187 = vector.multi_reduction <add>, %186, %cst_92 [1, 2] : vector<1x2x8xf32> to vector<1xf32>
      %188 = vector.shape_cast %187 : vector<1xf32> to vector<1x1x1xf32>
      %189 = vector.extract %188[0, 0, 0] : f32 from vector<1x1x1xf32>
      %190 = vector.broadcast %189 : f32 to vector<1x1xf32>
      %191 = arith.mulf %190, %159 : vector<1x1xf32>
      %c0_93 = arith.constant 0 : index
      %c3 = arith.constant 3 : index
      %192 = vector.load %arg13[%c0_93, %c3] : memref<1x8xf32, #tpu.memory_space<vmem>>, vector<1x1xf32>
      tpu.vector_store %arg13[%c0_93, %c3], %191 {strides = array<i32>} : memref<1x8xf32, #tpu.memory_space<vmem>>, vector<1x1xf32>,
      %cst_94 = arith.constant 0.000000e+00 : f32
      %193 = vector.broadcast %cst_94 : f32 to vector<1x2xf32>
      %c0_95 = arith.constant 0 : index
      %c6 = arith.constant 6 : index
      %194 = vector.load %arg13[%c0_95, %c6] : memref<1x8xf32, #tpu.memory_space<vmem>>, vector<1x2xf32>
      tpu.vector_store %arg13[%c0_95, %c6], %193 {strides = array<i32>} : memref<1x8xf32, #tpu.memory_space<vmem>>, vector<1x2xf32>,
    } else {
    }
    %8 = arith.index_cast %arg0 : i32 to index
    %9 = memref.load %arg2[%8] : memref<2xi32, #tpu.memory_space<smem>>
    %c0 = arith.constant 0 : index
    %c0_3 = arith.constant 0 : index
    %c0_4 = arith.constant 0 : index
    %10 = vector.load %arg6[%c0, %c0_3, %c0_4] : memref<1x16x1xi32, #tpu.memory_space<vmem>>, vector<1x16x1xi32>
    %11 = vector.shape_cast %10 : vector<1x16x1xi32> to vector<16x1xi32>
    %12 = tpu.iota {dimensions = array<i32: 0>} : vector<16x1xi32>
    %c16_i32 = arith.constant 16 : i32
    %13 = arith.muli %arg1, %c16_i32 : i32
    %14 = vector.broadcast %13 : i32 to vector<16x1xi32>
    %15 = arith.addi %12, %14 : vector<16x1xi32>
    %16 = vector.broadcast %9 : i32 to vector<16x1xi32>
    %17 = arith.cmpi slt, %15, %16 : vector<16x1xi32>
    %c-1_i32 = arith.constant -1 : i32
    %18 = vector.broadcast %c-1_i32 : i32 to vector<16x1xi32>
    %19 = arith.cmpi ne, %11, %18 : vector<16x1xi32>
    %20 = arith.andi %17, %19 : vector<16x1xi1>
    %21 = tpu.iota {dimensions = array<i32: 1>} : vector<1x128xi32>
    %22 = vector.broadcast %21 : vector<1x128xi32> to vector<16x128xi32>
    %23 = vector.broadcast %11 : vector<16x1xi32> to vector<16x128xi32>
    %24 = arith.cmpi eq, %22, %23 : vector<16x128xi32>
    %c0_5 = arith.constant 0 : index
    %c0_6 = arith.constant 0 : index
    %c0_7 = arith.constant 0 : index
    %25 = vector.load %arg4[%c0_5, %c0_6, %c0_7] : memref<1x16x128xf32, #tpu.memory_space<vmem>>, vector<1x16x128xf32>
    %26 = vector.shape_cast %25 : vector<1x16x128xf32> to vector<16x128xf32>
    %cst = arith.constant dense<0xFF800000> : vector<16xf32>
    %27 = vector.multi_reduction <maximumf>, %26, %cst [1] : vector<16x128xf32> to vector<16xf32>
    %28 = vector.shape_cast %27 : vector<16xf32> to vector<16x1xf32>
    %29 = vector.broadcast %28 : vector<16x1xf32> to vector<16x128xf32>
    %30 = arith.subf %26, %29 : vector<16x128xf32>
    %31 = math.exp %30 : vector<16x128xf32>
    %cst_8 = arith.constant dense<0.000000e+00> : vector<16xf32>
    %32 = vector.multi_reduction <add>, %31, %cst_8 [1] : vector<16x128xf32> to vector<16xf32>
    %33 = vector.shape_cast %32 : vector<16xf32> to vector<16x1xf32>
    %34 = math.log %33 : vector<16x1xf32>
    %35 = arith.addf %34, %28 : vector<16x1xf32>
    %cst_9 = arith.constant 0.000000e+00 : f32
    %36 = vector.broadcast %cst_9 : f32 to vector<16x128xf32>
    %37 = arith.select %24, %26, %36 : vector<16x128xi1>, vector<16x128xf32>
    %cst_10 = arith.constant dense<0.000000e+00> : vector<16xf32>
    %38 = vector.multi_reduction <add>, %37, %cst_10 [1] : vector<16x128xf32> to vector<16xf32>
    %39 = vector.shape_cast %38 : vector<16xf32> to vector<16x1xf32>
    %40 = arith.subf %35, %39 : vector<16x1xf32>
    %cst_11 = arith.constant 0.000000e+00 : f32
    %41 = vector.broadcast %cst_11 : f32 to vector<16x1xf32>
    %42 = arith.select %20, %40, %41 : vector<16x1xi1>, vector<16x1xf32>
    %43 = vector.shape_cast %42 : vector<16x1xf32> to vector<1x16x1xf32>
    %cst_12 = arith.constant dense<0.000000e+00> : vector<1xf32>
    %44 = vector.multi_reduction <add>, %43, %cst_12 [1, 2] : vector<1x16x1xf32> to vector<1xf32>
    %45 = vector.shape_cast %44 : vector<1xf32> to vector<1x1x1xf32>
    %46 = vector.extract %45[0, 0, 0] : f32 from vector<1x1x1xf32>
    %47 = vector.broadcast %46 : f32 to vector<1x1xf32>
    %48 = arith.cmpf oge, %39, %28 : vector<16x1xf32>
    %c0_i32_13 = arith.constant 0 : i32
    %49 = vector.broadcast %c0_i32_13 : i32 to vector<16x1xi32>
    %50 = arith.cmpi sge, %11, %49 : vector<16x1xi32>
    %51 = arith.andi %17, %50 : vector<16x1xi1>
    %52 = arith.andi %48, %51 : vector<16x1xi1>
    %53 = arith.extui %52 : vector<16x1xi1> to vector<16x1xi32>
    %54 = arith.sitofp %53 : vector<16x1xi32> to vector<16x1xf32>
    %55 = vector.shape_cast %54 : vector<16x1xf32> to vector<1x16x1xf32>
    %cst_14 = arith.constant dense<0.000000e+00> : vector<1xf32>
    %56 = vector.multi_reduction <add>, %55, %cst_14 [1, 2] : vector<1x16x1xf32> to vector<1xf32>
    %57 = vector.shape_cast %56 : vector<1xf32> to vector<1x1x1xf32>
    %58 = vector.extract %57[0, 0, 0] : f32 from vector<1x1x1xf32>
    %59 = vector.broadcast %58 : f32 to vector<1x1xf32>
    %c0_15 = arith.constant 0 : index
    %c0_16 = arith.constant 0 : index
    %c0_17 = arith.constant 0 : index
    %60 = vector.load %arg5[%c0_15, %c0_16, %c0_17] : memref<1x16x128xf32, #tpu.memory_space<vmem>>, vector<1x16x128xf32>
    %61 = vector.shape_cast %60 : vector<1x16x128xf32> to vector<16x128xf32>
    %cst_18 = arith.constant dense<0xFF800000> : vector<16xf32>
    %62 = vector.multi_reduction <maximumf>, %61, %cst_18 [1] : vector<16x128xf32> to vector<16xf32>
    %63 = vector.shape_cast %62 : vector<16xf32> to vector<16x1xf32>
    %64 = vector.broadcast %63 : vector<16x1xf32> to vector<16x128xf32>
    %65 = arith.subf %61, %64 : vector<16x128xf32>
    %66 = math.exp %65 : vector<16x128xf32>
    %cst_19 = arith.constant dense<0.000000e+00> : vector<16xf32>
    %67 = vector.multi_reduction <add>, %66, %cst_19 [1] : vector<16x128xf32> to vector<16xf32>
    %68 = vector.shape_cast %67 : vector<16xf32> to vector<16x1xf32>
    %69 = math.log %68 : vector<16x1xf32>
    %70 = arith.addf %69, %63 : vector<16x1xf32>
    %cst_20 = arith.constant 0.000000e+00 : f32
    %71 = vector.broadcast %cst_20 : f32 to vector<16x128xf32>
    %72 = arith.select %24, %61, %71 : vector<16x128xi1>, vector<16x128xf32>
    %cst_21 = arith.constant dense<0.000000e+00> : vector<16xf32>
    %73 = vector.multi_reduction <add>, %72, %cst_21 [1] : vector<16x128xf32> to vector<16xf32>
    %74 = vector.shape_cast %73 : vector<16xf32> to vector<16x1xf32>
    %75 = arith.subf %70, %74 : vector<16x1xf32>
    %cst_22 = arith.constant 0.000000e+00 : f32
    %76 = vector.broadcast %cst_22 : f32 to vector<16x1xf32>
    %77 = arith.select %20, %75, %76 : vector<16x1xi1>, vector<16x1xf32>
    %78 = vector.shape_cast %77 : vector<16x1xf32> to vector<1x16x1xf32>
    %cst_23 = arith.constant dense<0.000000e+00> : vector<1xf32>
    %79 = vector.multi_reduction <add>, %78, %cst_23 [1, 2] : vector<1x16x1xf32> to vector<1xf32>
    %80 = vector.shape_cast %79 : vector<1xf32> to vector<1x1x1xf32>
    %81 = vector.extract %80[0, 0, 0] : f32 from vector<1x1x1xf32>
    %82 = vector.broadcast %81 : f32 to vector<1x1xf32>
    %83 = arith.cmpf oge, %74, %63 : vector<16x1xf32>
    %c0_i32_24 = arith.constant 0 : i32
    %84 = vector.broadcast %c0_i32_24 : i32 to vector<16x1xi32>
    %85 = arith.cmpi sge, %11, %84 : vector<16x1xi32>
    %86 = arith.andi %17, %85 : vector<16x1xi1>
    %87 = arith.andi %83, %86 : vector<16x1xi1>
    %88 = arith.extui %87 : vector<16x1xi1> to vector<16x1xi32>
    %89 = arith.sitofp %88 : vector<16x1xi32> to vector<16x1xf32>
    %90 = vector.shape_cast %89 : vector<16x1xf32> to vector<1x16x1xf32>
    %cst_25 = arith.constant dense<0.000000e+00> : vector<1xf32>
    %91 = vector.multi_reduction <add>, %90, %cst_25 [1, 2] : vector<1x16x1xf32> to vector<1xf32>
    %92 = vector.shape_cast %91 : vector<1xf32> to vector<1x1x1xf32>
    %93 = vector.extract %92[0, 0, 0] : f32 from vector<1x1x1xf32>
    %94 = vector.broadcast %93 : f32 to vector<1x1xf32>
    %c0_26 = arith.constant 0 : index
    %c0_27 = arith.constant 0 : index
    %95 = vector.load %arg14[%c0_26, %c0_27] : memref<1x1xf32, #tpu.memory_space<vmem>>, vector<1x1xf32>
    %96 = arith.addf %95, %47 : vector<1x1xf32>
    %c0_28 = arith.constant 0 : index
    %c0_29 = arith.constant 0 : index
    %97 = vector.load %arg14[%c0_28, %c0_29] : memref<1x1xf32, #tpu.memory_space<vmem>>, vector<1x1xf32>
    tpu.vector_store %arg14[%c0_28, %c0_29], %96 {strides = array<i32>} : memref<1x1xf32, #tpu.memory_space<vmem>>, vector<1x1xf32>,
    %c0_30 = arith.constant 0 : index
    %c0_31 = arith.constant 0 : index
    %98 = vector.load %arg15[%c0_30, %c0_31] : memref<1x1xf32, #tpu.memory_space<vmem>>, vector<1x1xf32>
    %99 = arith.addf %98, %82 : vector<1x1xf32>
    %c0_32 = arith.constant 0 : index
    %c0_33 = arith.constant 0 : index
    %100 = vector.load %arg15[%c0_32, %c0_33] : memref<1x1xf32, #tpu.memory_space<vmem>>, vector<1x1xf32>
    tpu.vector_store %arg15[%c0_32, %c0_33], %99 {strides = array<i32>} : memref<1x1xf32, #tpu.memory_space<vmem>>, vector<1x1xf32>,
    %c0_34 = arith.constant 0 : index
    %c0_35 = arith.constant 0 : index
    %101 = vector.load %arg16[%c0_34, %c0_35] : memref<1x1xf32, #tpu.memory_space<vmem>>, vector<1x1xf32>
    %102 = arith.addf %101, %59 : vector<1x1xf32>
    %c0_36 = arith.constant 0 : index
    %c0_37 = arith.constant 0 : index
    %103 = vector.load %arg16[%c0_36, %c0_37] : memref<1x1xf32, #tpu.memory_space<vmem>>, vector<1x1xf32>
    tpu.vector_store %arg16[%c0_36, %c0_37], %102 {strides = array<i32>} : memref<1x1xf32, #tpu.memory_space<vmem>>, vector<1x1xf32>,
    %c0_38 = arith.constant 0 : index
    %c0_39 = arith.constant 0 : index
    %104 = vector.load %arg17[%c0_38, %c0_39] : memref<1x1xf32, #tpu.memory_space<vmem>>, vector<1x1xf32>
    %105 = arith.addf %104, %94 : vector<1x1xf32>
    %c0_40 = arith.constant 0 : index
    %c0_41 = arith.constant 0 : index
    %106 = vector.load %arg17[%c0_40, %c0_41] : memref<1x1xf32, #tpu.memory_space<vmem>>, vector<1x1xf32>
    tpu.vector_store %arg17[%c0_40, %c0_41], %105 {strides = array<i32>} : memref<1x1xf32, #tpu.memory_space<vmem>>, vector<1x1xf32>,
    %c0_42 = arith.constant 0 : index
    %c0_43 = arith.constant 0 : index
    %107 = vector.load %arg18[%c0_42, %c0_43] : memref<1x1xf32, #tpu.memory_space<vmem>>, vector<1x1xf32>
    %108 = arith.extui %17 : vector<16x1xi1> to vector<16x1xi32>
    %109 = arith.sitofp %108 : vector<16x1xi32> to vector<16x1xf32>
    %110 = vector.shape_cast %109 : vector<16x1xf32> to vector<1x16x1xf32>
    %cst_44 = arith.constant dense<0.000000e+00> : vector<1xf32>
    %111 = vector.multi_reduction <add>, %110, %cst_44 [1, 2] : vector<1x16x1xf32> to vector<1xf32>
    %112 = vector.shape_cast %111 : vector<1xf32> to vector<1x1x1xf32>
    %113 = vector.extract %112[0, 0, 0] : f32 from vector<1x1x1xf32>
    %114 = vector.broadcast %113 : f32 to vector<1x1xf32>
    %115 = arith.addf %107, %114 : vector<1x1xf32>
    %c0_45 = arith.constant 0 : index
    %c0_46 = arith.constant 0 : index
    %116 = vector.load %arg18[%c0_45, %c0_46] : memref<1x1xf32, #tpu.memory_space<vmem>>, vector<1x1xf32>
    tpu.vector_store %arg18[%c0_45, %c0_46], %115 {strides = array<i32>} : memref<1x1xf32, #tpu.memory_space<vmem>>, vector<1x1xf32>,
    %c0_47 = arith.constant 0 : index
    %c0_48 = arith.constant 0 : index
    %117 = vector.load %arg19[%c0_47, %c0_48] : memref<1x1xf32, #tpu.memory_space<vmem>>, vector<1x1xf32>
    %118 = arith.extui %20 : vector<16x1xi1> to vector<16x1xi32>
    %119 = arith.sitofp %118 : vector<16x1xi32> to vector<16x1xf32>
    %120 = vector.shape_cast %119 : vector<16x1xf32> to vector<1x16x1xf32>
    %cst_49 = arith.constant dense<0.000000e+00> : vector<1xf32>
    %121 = vector.multi_reduction <add>, %120, %cst_49 [1, 2] : vector<1x16x1xf32> to vector<1xf32>
    %122 = vector.shape_cast %121 : vector<1xf32> to vector<1x1x1xf32>
    %123 = vector.extract %122[0, 0, 0] : f32 from vector<1x1x1xf32>
    %124 = vector.broadcast %123 : f32 to vector<1x1xf32>
    %125 = arith.addf %117, %124 : vector<1x1xf32>
    %c0_50 = arith.constant 0 : index
    %c0_51 = arith.constant 0 : index
    %126 = vector.load %arg19[%c0_50, %c0_51] : memref<1x1xf32, #tpu.memory_space<vmem>>, vector<1x1xf32>
    tpu.vector_store %arg19[%c0_50, %c0_51], %125 {strides = array<i32>} : memref<1x1xf32, #tpu.memory_space<vmem>>, vector<1x1xf32>,
    %127 = arith.extui %5 : i1 to i32
    %c0_i32_52 = arith.constant 0 : i32
    %128 = arith.cmpi ne, %127, %c0_i32_52 : i32
    scf.if %128 {
      %c0_53 = arith.constant 0 : index
      %c0_54 = arith.constant 0 : index
      %129 = vector.load %arg19[%c0_53, %c0_54] : memref<1x1xf32, #tpu.memory_space<vmem>>, vector<1x1xf32>
      %cst_55 = arith.constant 1.000000e+00 : f32
      %130 = vector.broadcast %cst_55 : f32 to vector<1x1xf32>
      %131 = arith.divf %130, %129 : vector<1x1xf32>
      %c0_56 = arith.constant 0 : index
      %c0_57 = arith.constant 0 : index
      %132 = vector.load %arg18[%c0_56, %c0_57] : memref<1x1xf32, #tpu.memory_space<vmem>>, vector<1x1xf32>
      %cst_58 = arith.constant 1.000000e+00 : f32
      %133 = vector.broadcast %cst_58 : f32 to vector<1x1xf32>
      %134 = arith.divf %133, %132 : vector<1x1xf32>
      %c0_59 = arith.constant 0 : index
      %c0_60 = arith.constant 0 : index
      %135 = vector.load %arg14[%c0_59, %c0_60] : memref<1x1xf32, #tpu.memory_space<vmem>>, vector<1x1xf32>
      %c0_61 = arith.constant 0 : index
      %c0_62 = arith.constant 0 : index
      %136 = vector.load %arg15[%c0_61, %c0_62] : memref<1x1xf32, #tpu.memory_space<vmem>>, vector<1x1xf32>
      %137 = arith.addf %135, %136 : vector<1x1xf32>
      %138 = arith.mulf %137, %131 : vector<1x1xf32>
      %c0_63 = arith.constant 0 : index
      %c0_64 = arith.constant 0 : index
      %139 = vector.load %arg13[%c0_63, %c0_64] : memref<1x8xf32, #tpu.memory_space<vmem>>, vector<1x1xf32>
      tpu.vector_store %arg13[%c0_63, %c0_64], %138 {strides = array<i32>} : memref<1x8xf32, #tpu.memory_space<vmem>>, vector<1x1xf32>,
      %c0_65 = arith.constant 0 : index
      %c0_66 = arith.constant 0 : index
      %140 = vector.load %arg16[%c0_65, %c0_66] : memref<1x1xf32, #tpu.memory_space<vmem>>, vector<1x1xf32>
      %141 = arith.mulf %140, %134 : vector<1x1xf32>
      %c0_67 = arith.constant 0 : index
      %c4 = arith.constant 4 : index
      %142 = vector.load %arg13[%c0_67, %c4] : memref<1x8xf32, #tpu.memory_space<vmem>>, vector<1x1xf32>
      tpu.vector_store %arg13[%c0_67, %c4], %141 {strides = array<i32>} : memref<1x8xf32, #tpu.memory_space<vmem>>, vector<1x1xf32>,
      %c0_68 = arith.constant 0 : index
      %c0_69 = arith.constant 0 : index
      %143 = vector.load %arg17[%c0_68, %c0_69] : memref<1x1xf32, #tpu.memory_space<vmem>>, vector<1x1xf32>
      %144 = arith.mulf %143, %134 : vector<1x1xf32>
      %c0_70 = arith.constant 0 : index
      %c5 = arith.constant 5 : index
      %145 = vector.load %arg13[%c0_70, %c5] : memref<1x8xf32, #tpu.memory_space<vmem>>, vector<1x1xf32>
      tpu.vector_store %arg13[%c0_70, %c5], %144 {strides = array<i32>} : memref<1x8xf32, #tpu.memory_space<vmem>>, vector<1x1xf32>,
    } else {
    }
    return
  }
  func.func @transform_0(%arg0: i32, %arg1: i32) -> i32 {
    %c0_i32 = arith.constant 0 : i32
    %c0_i32_0 = arith.constant 0 : i32
    return %c0_i32 : i32
  }
  func.func @transform_1(%arg0: i32, %arg1: i32) -> (i32, i32) {
    %c0_i32 = arith.constant 0 : i32
    %c0_i32_0 = arith.constant 0 : i32
    %c0_i32_1 = arith.constant 0 : i32
    return %c0_i32, %c0_i32_0 : i32, i32
  }
  func.func @transform_2(%arg0: i32, %arg1: i32) -> (i32, i32, i32) {
    %c0_i32 = arith.constant 0 : i32
    %c0_i32_0 = arith.constant 0 : i32
    return %arg0, %arg1, %c0_i32 : i32, i32, i32
  }
  func.func @transform_3(%arg0: i32, %arg1: i32) -> (i32, i32, i32) {
    %c0_i32 = arith.constant 0 : i32
    %c0_i32_0 = arith.constant 0 : i32
    return %arg0, %arg1, %c0_i32 : i32, i32, i32
  }
  func.func @transform_4(%arg0: i32, %arg1: i32) -> (i32, i32, i32) {
    %c0_i32 = arith.constant 0 : i32
    %c0_i32_0 = arith.constant 0 : i32
    return %arg0, %arg1, %c0_i32 : i32, i32, i32
  }
  func.func @transform_5(%arg0: i32, %arg1: i32) -> (i32, i32) {
    %c0_i32 = arith.constant 0 : i32
    %c0_i32_0 = arith.constant 0 : i32
    %c0_i32_1 = arith.constant 0 : i32
    return %c0_i32, %c0_i32_0 : i32, i32
  }
  func.func @transform_6(%arg0: i32, %arg1: i32) -> (i32, i32) {
    %c0_i32 = arith.constant 0 : i32
    %c0_i32_0 = arith.constant 0 : i32
    %c0_i32_1 = arith.constant 0 : i32
    return %c0_i32, %c0_i32_0 : i32, i32
  }
  func.func @transform_7(%arg0: i32, %arg1: i32) -> (i32, i32) {
    %c0_i32 = arith.constant 0 : i32
    %c0_i32_0 = arith.constant 0 : i32
    %c0_i32_1 = arith.constant 0 : i32
    return %c0_i32, %c0_i32_0 : i32, i32
  }
  func.func @transform_8(%arg0: i32, %arg1: i32) -> (i32, i32) {
    %c0_i32 = arith.constant 0 : i32
    %c0_i32_0 = arith.constant 0 : i32
    %c0_i32_1 = arith.constant 0 : i32
    return %c0_i32, %c0_i32_0 : i32, i32
  }
  func.func @transform_9(%arg0: i32, %arg1: i32) -> (i32, i32) {
    %c0_i32 = arith.constant 0 : i32
    %c0_i32_0 = arith.constant 0 : i32
    %c0_i32_1 = arith.constant 0 : i32
    return %c0_i32, %c0_i32_0 : i32, i32
  }
  func.func @transform_10(%arg0: i32, %arg1: i32) -> (i32, i32) {
    %c0_i32 = arith.constant 0 : i32
    %c0_i32_0 = arith.constant 0 : i32
    %c0_i32_1 = arith.constant 0 : i32
    return %c0_i32, %c0_i32_0 : i32, i32
  }
  func.func @transform_11(%arg0: i32, %arg1: i32) -> (i32, i32) {
    %c0_i32 = arith.constant 0 : i32
    %c0_i32_0 = arith.constant 0 : i32
    %c0_i32_1 = arith.constant 0 : i32
    return %c0_i32, %c0_i32_0 : i32, i32
  }
}

</mosaic_0001>

<bundles_post_ra>
// kernel: fastspeech2_loss_discrete.1
= control target key start
LH: loop header
LB: loop body
LE: loop exit
PB: predicated region body
PF: predicated region fallthrough
CT: control target
= control target key end

     0   :  { %16 = vsyncpa [#allocation9], 0  ;;  %s1160_s17 = smov 0   ;;  %s1162_s18 = smov 0   ;;  %s1392_s0 = inlined_call_operand.vmem [shape: s32[2], index: 0, kind: input, shape index: {}]   ;;  %s1393_s1 = inlined_call_operand.vmem [shape: s32[2,1], index: 1, kind: input, shape index: {}]   ;;  %s1394_s2 = inlined_call_operand.vmem [shape: f32[2,16,128], index: 2, kind: input, shape index: {}]   ;;  %s1395_s3 = inlined_call_operand.vmem [shape: f32[2,16,128], index: 3, kind: input, shape index: {}]   ;;  %s1396_s4 = inlined_call_operand.vmem [shape: s32[2,16,1], index: 4, kind: input, shape index: {}]   ;;  %s1397_s5 = inlined_call_operand.vmem [shape: f32[2,8], index: 5, kind: input, shape index: {}]   ;;  %s1398_s6 = inlined_call_operand.vmem [shape: f32[2,8], index: 6, kind: input, shape index: {}]   ;;  %s1399_s7 = inlined_call_operand.vmem [shape: f32[2,8], index: 7, kind: input, shape index: {}]   ;;  %s1400_s8 = inlined_call_operand.vmem [shape: f32[2,8], index: 8, kind: input, shape index: {}]   ;;  %s1401_s9 = inlined_call_operand.vmem [shape: f32[2,8], index: 9, kind: input, shape index: {}]   ;;  %s1402_s10 = inlined_call_operand.vmem [shape: f32[2,8], index: 10, kind: input, shape index: {}]   ;;  %s1403_s11 = inlined_call_operand.vmem [shape: f32[1,8], index: 11, kind: output, shape index: {}]  }
   0x1   :  { %s1164_s19 = smov 0  }
   0x2 LB: > { %s932_s20 = sadd.s32 4294967295, %s1091_s19   ;;  %s34_s21 = sadd.s32 1, %s1087_s18  ;;  %s1091_s19 = sphi %s1164_s19, %s22_s19   ;;  %s1087_s18 = sphi %s1162_s18, %s1419_s18   ;;  %s1083_s17 = sphi %s1160_s17, %s1418_s17  }
   0x3   : > { %p36_p0 = scmp.ge.s32.totalorder %s34_s21, 2  ;;  %p933_p1 = scmp.ge.s32.totalorder %s1091_s19, 1 }
   0x4   : > { %p312_p2 = scmp.lt.s32.totalorder %s1091_s19, 3  ;;  %p1185_p4 = scmp.eq.s32.totalorder %s932_s20, 0 }
   0x5   : > { %s1421_s21 = smov (%p36_p0, %s34_s21), 0  ;;  %s325_s26 = sshll.u32 %s1392_s0, 4  ;;  %s326_s26 = int_to_ptr.vmem [resolvable:$true] %s325_s26 }
   0x6   : > { %p1181_p3 = pnand %p933_p1, %p312_p2  ;;  %s1050_s27 = scalar_lea.vmem %s326_s26, 16 }
   0x7   : > { %p1051_p7 = scmp.ne.s32.totalorder %s326_s26, %s1050_s27  ;;  %p1058_p11 = scmp.lt.s32.totalorder %s326_s26, %s326_s26 }
   0x8   : > { %p986_p5 = pneg %p1181_p3  ;;  %p1059_p12 = scmp.lt.s32.totalorder %s1050_s27, %s1050_s27 }
   0xa   : > { %p987_p6 = pnand %p1185_p4, %p986_p5  ;;  %p1060_p13 = por %p1059_p12, %p1058_p11 }
   0xc   : > { %p1052_p8 = pneg %p987_p6 }
   0xe   : > { %p1053_p9 = pnand %p1052_p8, %p1051_p7 }
  0x10   : > { %p1054_p10 = pneg %p1053_p9 }
  0x12   : > { %p1061_p0 = pnand %p1060_p13, %p1054_p10 }
  0x14   : > { %1064 = shalt.err (!%p1061_p0)
}
  0x15   : > { %s1093_s28 = smov [#allocation8]   ;;  %398 = sbr.rel (%p1181_p3) target bundleno = 1072 (0x430), region = 64 }
  0x16   : > { %989 = dma.vmem_to_smem (!%p987_p6), %s326_s26, 16, %s1093_s28, [#allocation9]  }
  0x1c   : > { %1078 = dma.done.wait (%p1185_p4), [#allocation9], 16  }
  0x1d   : > { %1080 = vsyncadd (%p1185_p4), [#allocation9], 4294967280 }
  0x1e   : > { %404 = sfence }
  0x1f   : > { %p457_p1 = scmp.lt.s32.totalorder %s1083_s17, 1  ;;  %p486_p2 = scmp.eq.s32.totalorder %s1083_s17, 0 }
  0x20   : > { %p490_p5 = scmp.eq.s32.totalorder %s1083_s17, 1  ;;  %v502_v0 = vld [vmem:[%s1393_s1] sm:$0x3] (%p486_p2)  ;;  %v1094_v1 = vmov (%p486_p2), 0   ;;  %vm495_vm0 = vcmask (%p486_p2), 0   ;;  %v1095_v2 = vmov (%p486_p2), 0.0   ;;  %v509_v8 = vlaneseq (%p486_p2) }
  0x21   : > { %s458_s29 = scalar_select %p457_p1, %s1083_s17, 1 }
  0x22   : > { %494 = sbr.rel (!%p486_p2) target bundleno = 388 (0x184), region = 72  ;;  %1023 = vset.pattern.permute.xlu0 (%p486_p2), %v1094_v1  ;;  %496 = vst.msk [vmem:[#allocation2] sm:$0x1] (%p486_p2), %vm495_vm0, %v1095_v2  ;;  %497 = vst.msk [vmem:[#allocation3] sm:$0x1] (%p486_p2), %vm495_vm0, %v1095_v2  ;;  %v510_v12 = vand.u32 (%p486_p2), 127, %v509_v8 }
  0x23   : > { %s957_s30 = sshll.u32 %s458_s29, 4  ;;  %512 = vperm.xlu0 (%p486_p2), %1023, %v502_v0   ;;  %498 = vst.msk [vmem:[#allocation4] sm:$0x1] (%p486_p2), %vm495_vm0, %v1095_v2  ;;  %499 = vst.msk [vmem:[#allocation5] sm:$0x1] (%p486_p2), %vm495_vm0, %v1095_v2  ;;  %vm517_vm1 = vcmask (%p486_p2), 58368  }
  0x24   : > { %s1209_s14 = scalar_lea.vmem %s1394_s2, %s957_s30  ;;  %s1214_s20 = scalar_lea.vmem %s1395_s3, %s957_s30  ;;  %500 = vst.msk [vmem:[#allocation6] sm:$0x1] (%p486_p2), %vm495_vm0, %v1095_v2  ;;  %501 = vst.msk [vmem:[#allocation7] sm:$0x1] (%p486_p2), %vm495_vm0, %v1095_v2  ;;  %v504_v3 = vld [vmem:[%s1398_s6] sm:$0x3] (%p486_p2) }
  0x25   : > { %s1219_s24 = scalar_lea.vmem %s1396_s4, %s957_s30  ;;  %v531_v4 = vadd.f32 (%p486_p2), 1.0, %v504_v3  ;;  %v503_v7 = vld [vmem:[%s1397_s5] sm:$0x3] (%p486_p2)  ;;  %vm549_vm3 = vcmask (%p486_p2), 8200   ;;  %vm566_vm4 = vcmask (%p486_p2), 16400   ;;  %vm583_vm5 = vcmask (%p486_p2), 24600  }
  0x26   : > { %v505_v9 = vld [vmem:[%s1399_s7] sm:$0x3] (%p486_p2)  ;;  %vm585_vm6 = vcmask (%p486_p2), 57392  }
  0x27   : > { %1024 = vlog2.f32 (%p486_p2), %v531_v4  ;;  %v506_v10 = vld [vmem:[%s1400_s8] sm:$0x3] (%p486_p2) }
  0x28   : > { %v551_v13 = vsub.f32 (%p486_p2), %v505_v9, %v506_v10  ;;  %v507_v14 = vld [vmem:[%s1401_s9] sm:$0x3] (%p486_p2) }
  0x29   : > { %v508_v15 = vld [vmem:[%s1402_s10] sm:$0x3] }
  0x2a   : > { %v552_v18 = vmul.f32 %v551_v13, %v551_v13  ;;  %v568_v19 = vsub.f32 %v507_v14, %v508_v15 }
  0x2c   : > { %v569_v25 = vmul.f32 %v568_v19, %v568_v19 }
  0x31   : > { %v1025_v5 = vpop.eup %1024 }
  0x32   : > { %v533_v6 = vmul.f32 0.6931472, %v1025_v5 }
  0x34   : > { %v534_v11 = vsub.f32 %v503_v7, %v533_v6 }
  0x36   : > { %v535_v16 = vmul.f32 %v534_v11, %v534_v11 }
  0xa2   : > { %v513_v17 = vpop.permute.xlu0 %512 }
  0xa3   : > { %vm514_vm2 = vcmp.lt.s32.totalorder %v510_v12, %v513_v17 }
  0xa4   : > { %v946_v20 = vsel %vm514_vm2, 1.0, %v1095_v2 }
  0xa5   : > { %v518_v21 = vsel %vm517_vm1, %v946_v20, 0.0  ;;  %v536_v22 = vmul.f32 %v946_v20, %v535_v16  ;;  %v553_v24 = vmul.f32 %v946_v20, %v552_v18  ;;  %v570_v27 = vmul.f32 %v946_v20, %v569_v25 }
  0xa6   : > { %519 = vadd.xlane.f32.xlu0 %v518_v21 }
  0xa7   : > { %v537_v23 = vsel %vm517_vm1, %v536_v22, 0.0  ;;  %v554_v26 = vsel %vm517_vm1, %v553_v24, 0.0  ;;  %v571_v28 = vsel %vm517_vm1, %v570_v27, 0.0 }
  0xa8   : > { %538 = vadd.xlane.f32.xlu1 %v537_v23 }
  0xac   : > { %555 = vadd.xlane.f32.xlu1 %v554_v26 }
  0xb0   : > { %572 = vadd.xlane.f32.xlu1 %v571_v28 }
 0x133   : > { %v520_v29 = vpop.xlane.xlu0 %519 }
 0x134   : > { %v521_v30 = vrot.slane %v520_v29, 4 }
 0x135   : > { %v539_v31 = vpop.xlane.xlu1 %538 }
 0x136   : > { %v522_v32 = vadd.f32 %v521_v30, %v520_v29  ;;  %v540_v33 = vrot.slane %v539_v31, 4 }
 0x138   : > { %v523_v34 = vrot.slane %v522_v32, 2  ;;  %v541_v35 = vadd.f32 %v540_v33, %v539_v31 }
 0x139   : > { %v556_v36 = vpop.xlane.xlu1 %555 }
 0x13a   : > { %v542_v37 = vrot.slane %v541_v35, 2  ;;  %v557_v38 = vrot.slane %v556_v36, 4  ;;  %v524_v39 = vadd.f32 %v523_v34, %v522_v32 }
 0x13c   : > { %v558_v40 = vadd.f32 %v557_v38, %v556_v36  ;;  %v525_v41 = vrot.slane %v524_v39, 1  ;;  %v543_v42 = vadd.f32 %v542_v37, %v541_v35 }
 0x13d   : > { %v573_v43 = vpop.xlane.xlu1 %572 }
 0x13e   : > { %v559_v44 = vrot.slane %v558_v40, 2  ;;  %v574_v45 = vrot.slane %v573_v43, 4  ;;  %v526_v46 = vadd.f32 %v525_v41, %v524_v39  ;;  %v544_v47 = vrot.slane %v543_v42, 1 }
 0x140   : > { %v575_v48 = vadd.f32 %v574_v45, %v573_v43  ;;  %962 = vpush %v526_v46  ;;  %v545_v49 = vadd.f32 %v544_v47, %v543_v42  ;;  %v560_v50 = vadd.f32 %v559_v44, %v558_v40 }
 0x142   : > { %v576_v51 = vrot.slane %v575_v48, 2  ;;  %964 = vpush %v545_v49  ;;  %v561_v52 = vrot.slane %v560_v50, 1 }
 0x144   : > { %v577_v53 = vadd.f32 %v576_v51, %v575_v48  ;;  %v562_v54 = vadd.f32 %v561_v52, %v560_v50 }
 0x146   : > { %966 = vpush %v562_v54  ;;  %v578_v55 = vrot.slane %v577_v53, 1 }
 0x148   : > { %v579_v56 = vadd.f32 %v578_v55, %v577_v53 }
 0x14a   : > { %968 = vpush %v579_v56 }
 0x171   : > { %s963_s27 = spop %962 }
 0x172   : > { %v528_v57 = vstv %s963_s27 }
 0x173   : > { %1026 = vrcp.f32 %v528_v57  ;;  %s965_s28 = spop %964 }
 0x174   : > { %v547_v59 = vstv %s965_s28 }
 0x177   : > { %s967_s29 = spop %966 }
 0x178   : > { %v564_v60 = vstv %s967_s29 }
 0x17b   : > { %s969_s30 = spop %968 }
 0x17c   : > { %v581_v61 = vstv %s969_s30 }
 0x17d   : > { %v1027_v58 = vpop.eup %1026 }
 0x17e   : > { %v548_v62 = vmul.f32 %v1027_v58, %v547_v59  ;;  %v565_v63 = vmul.f32 %v1027_v58, %v564_v60  ;;  %v582_v0 = vmul.f32 %v1027_v58, %v581_v61 }
 0x180   : > { %550 = vst.msk [vmem:[%s1403_s11] sm:$0x1] %vm549_vm3, %v548_v62 }
 0x181   : > { %567 = vst.msk [vmem:[%s1403_s11] sm:$0x1] %vm566_vm4, %v565_v63 }
 0x182   : > { %584 = vst.msk [vmem:[%s1403_s11] sm:$0x1] %vm583_vm5, %v582_v0 }
 0x183   : > { %586 = vst.msk [vmem:[%s1403_s11] sm:$0x1] %vm585_vm6, %v1095_v2 }
 0x184 PF: > { %v614_v1 = vld [vmem:[%s1209_s14] sm:$0xff]  ;;  %v615_v4 = vld [vmem:[%s1209_s14 + $0x8] sm:$0xff]  ;;  %v1096_v6 = vmov 0   ;;  %v590_v20 = vlaneseq  ;;  %s587_s14 = sld [smem:[#allocation8 + %s1083_s17]]  ;;  %vm646_vm3 = vcmask 7168   ;;  %v1097_v41 = vmov 0.0  }
 0x185   : > { %v685_v3 = vld [vmem:[%s1214_s20] sm:$0xff]  ;;  %616 = vmax.xlane.f32.xlu0 %v614_v1  ;;  %v686_v5 = vld [vmem:[%s1214_s20 + $0x8] sm:$0xff]  ;;  %1029 = vset.pattern.permute.xlu1 %v1096_v6  ;;  %s1098_s12 = smov (%p490_p5), 4   ;;  %s1099_s15 = smov (%p490_p5), 5  }
 0x186   : > { %687 = vmax.xlane.f32.xlu1 %v685_v3  ;;  %1028 = vset.pattern.permute.xlu0 %v1096_v6  ;;  %v589_v7 = vld [vmem:[%s1219_s24 + $0x8] sm:$0xff]  ;;  %v588_v2 = vld [vmem:[%s1219_s24] sm:$0xff]  ;;  %v605_v23 = vand.u32 127, %v590_v20  ;;  %v1281_v31 = vshrl.u32 %v590_v20, 7 }
 0x187   : > { %vm662_vm9 = vcmp.ge.s32.totalorder %v588_v2, 0  ;;  %vm663_vm12 = vcmp.ge.s32.totalorder %v589_v7, 0  ;;  %vm600_vm13 = vcmp.ne.s32.totalorder %v588_v2, 4294967295  ;;  %vm601_vm0 = vcmp.ne.s32.totalorder %v589_v7, 4294967295 }
 0x188   : > { %v592_v36 = vadd.s32 8, %v1281_v31 }
 0x189   : > { %618 = vmax.xlane.f32.xlu0 %v615_v4 }
 0x18a   : > { %689 = vmax.xlane.f32.xlu1 %v686_v5  ;;  %v597_v33 = vstv %s587_s14 }
 0x18b   : > { %vm1284_vm10 = vcmp.lt.s32.totalorder %v1281_v31, %v597_v33  ;;  %vm1295_vm14 = vcmp.lt.s32.totalorder %v592_v36, %v597_v33 }
 0x18c   : > { %vm1290_vm11 = vmand %vm1284_vm10, %vm662_vm9 }
 0x18d   : > { %vm1301_vm15 = vmand %vm1295_vm14, %vm663_vm12 }
 0x18e   : > { %vm1307_vm1 = vmand %vm1284_vm10, %vm600_vm13  ;;  %vm827_vm13 = vcmask (%p490_p5), 32800  }
 0x18f   : > { %vm1313_vm2 = vmand %vm1295_vm14, %vm601_vm0  ;;  %v953_v42 = vsel %vm1307_vm1, 1.0, %v1097_v41 }
 0x190   : > { %v954_v43 = vsel %vm1313_vm2, 1.0, %v1097_v41  ;;  %v789_v44 = vsel %vm646_vm3, %v953_v42, 0.0 }
 0x191   : > { %v790_v45 = vsel %vm646_vm3, %v954_v43, 0.0 }
 0x192   : > { %v1323_v46 = vadd.f32 %v790_v45, %v789_v44 }
 0x19b   : > { %610 = vperm.xlu1 %1029, %v589_v7  }
 0x19f   : > { %607 = vperm.xlu0 %1028, %v588_v2  }
 0x212   : > { %v1268_v8 = vpop.xlane.xlu0 %616 }
 0x213   : > { %v1270_v9 = vpop.xlane.xlu1 %687  ;;  %v620_v10 = vsub.f32 %v614_v1, %v1268_v8 }
 0x214   : > { %v691_v11 = vsub.f32 %v685_v3, %v1270_v9 }
 0x215   : > { %v622_v12 = vmul.f32 1.442695, %v620_v10 }
 0x216   : > { %v693_v13 = vmul.f32 1.442695, %v691_v11  ;;  %v1274_v14 = vpop.xlane.xlu0 %618 }
 0x217   : > { %v1276_v15 = vpop.xlane.xlu1 %689  ;;  %1030 = vpow2.f32 %v622_v12  ;;  %v621_v16 = vsub.f32 %v615_v4, %v1274_v14 }
 0x218   : > { %v692_v17 = vsub.f32 %v686_v5, %v1276_v15  ;;  %1032 = vpow2.f32 %v693_v13  ;;  %v951_v13 = vsel %vm1284_vm10, 1.0, %v1097_v41  ;;  %vm753_vm10 = vcmask 0  }
 0x219   : > { %v624_v18 = vmul.f32 1.442695, %v621_v16 }
 0x21a   : > { %v695_v19 = vmul.f32 1.442695, %v692_v17 }
 0x21b   : > { %1034 = vpow2.f32 %v624_v18  ;;  %v611_v27 = vpop.permute.xlu1 %610 }
 0x21c   : > { %1036 = vpow2.f32 %v695_v19  ;;  %vm613_vm8 = vcmp.eq.s32.totalorder %v605_v23, %v611_v27 }
 0x21d   : > { %v637_v29 = vsel %vm613_vm8, %v615_v4, 0.0  ;;  %v708_v32 = vsel %vm613_vm8, %v686_v5, 0.0 }
 0x21e   : > { %v608_v25 = vpop.permute.xlu0 %607 }
 0x21f   : > { %vm612_vm7 = vcmp.eq.s32.totalorder %v605_v23, %v608_v25 }
 0x220   : > { %v636_v28 = vsel %vm612_vm7, %v614_v1, 0.0  ;;  %v707_v30 = vsel %vm612_vm7, %v685_v3, 0.0 }
 0x221   : > { %v1031_v21 = vpop.eup %1030 }
 0x222   : > { %626 = vadd.xlane.f32.xlu1 %v1031_v21  ;;  %v1033_v22 = vpop.eup %1032 }
 0x225   : > { %v1035_v24 = vpop.eup %1034 }
 0x226   : > { %697 = vadd.xlane.f32.xlu1 %v1033_v22  ;;  %628 = vadd.xlane.f32.xlu0 %v1035_v24  ;;  %v1037_v26 = vpop.eup %1036  ;;  %v769_v24 = vsel %vm646_vm3, %v951_v13, 0.0  ;;  %v758_v13 = vld [vmem:[#allocation4] sm:$0x1] }
 0x22a   : > { %699 = vadd.xlane.f32.xlu1 %v1037_v26 }
 0x22e   : > { %638 = vadd.xlane.f32.xlu1 %v636_v28 }
 0x232   : > { %640 = vadd.xlane.f32.xlu1 %v637_v29 }
 0x236   : > { %709 = vadd.xlane.f32.xlu1 %v707_v30 }
 0x23a   : > { %711 = vadd.xlane.f32.xlu1 %v708_v32 }
 0x2af   : > { %v627_v47 = vpop.xlane.xlu1 %626 }
 0x2b0   : > { %1038 = vlog2.f32 %v627_v47 }
 0x2b3   : > { %v698_v48 = vpop.xlane.xlu1 %697  ;;  %v629_v49 = vpop.xlane.xlu0 %628 }
 0x2b4   : > { %1040 = vlog2.f32 %v698_v48 }
 0x2b5   : > { %1042 = vlog2.f32 %v629_v49 }
 0x2b7   : > { %v700_v50 = vpop.xlane.xlu1 %699 }
 0x2b8   : > { %1044 = vlog2.f32 %v700_v50 }
 0x2ba   : > { %v1039_v51 = vpop.eup %1038 }
 0x2bb   : > { %v631_v52 = vmul.f32 0.6931472, %v1039_v51  ;;  %v639_v53 = vpop.xlane.xlu1 %638 }
 0x2bc   : > { %vm660_vm4 = vcmp.ge.f32.partialorder %v639_v53, %v1268_v8 }
 0x2bd   : > { %v634_v54 = vadd.f32 %v631_v52, %v1268_v8  ;;  %vm666_vm5 = vmand %vm660_vm4, %vm1290_vm11 }
 0x2be   : > { %v1041_v55 = vpop.eup %1040  ;;  %v947_v61 = vsel %vm666_vm5, 1.0, %v1097_v41 }
 0x2bf   : > { %v1043_v56 = vpop.eup %1042  ;;  %v702_v57 = vmul.f32 0.6931472, %v1041_v55  ;;  %v642_v58 = vsub.f32 %v634_v54, %v639_v53  ;;  %v641_v59 = vpop.xlane.xlu1 %640  ;;  %v672_v5 = vsel %vm646_vm3, %v947_v61, 0.0 }
 0x2c0   : > { %v633_v60 = vmul.f32 0.6931472, %v1043_v56  ;;  %vm661_vm6 = vcmp.ge.f32.partialorder %v641_v59, %v1274_v14 }
 0x2c1   : > { %vm667_vm7 = vmand %vm661_vm6, %vm1301_vm15  ;;  %v705_v62 = vadd.f32 %v702_v57, %v1270_v9  ;;  %v644_v7 = vsel %vm1307_vm1, %v642_v58, 0.0 }
 0x2c2   : > { %v1045_v63 = vpop.eup %1044  ;;  %v635_v0 = vadd.f32 %v633_v60, %v1274_v14  ;;  %v948_v1 = vsel %vm667_vm7, 1.0, %v1097_v41  ;;  %v647_v16 = vsel %vm646_vm3, %v644_v7, 0.0 }
 0x2c3   : > { %v704_v3 = vmul.f32 0.6931472, %v1045_v63  ;;  %v710_v4 = vpop.xlane.xlu1 %709  ;;  %v673_v6 = vsel %vm646_vm3, %v948_v1, 0.0 }
 0x2c4   : > { %v643_v2 = vsub.f32 %v635_v0, %v641_v59  ;;  %v713_v8 = vsub.f32 %v705_v62, %v710_v4  ;;  %vm730_vm8 = vcmp.ge.f32.partialorder %v710_v4, %v1270_v9  ;;  %v674_v10 = vadd.f32 %v673_v6, %v672_v5 }
 0x2c5   : > { %vm732_vm9 = vmand %vm730_vm8, %vm1290_vm11  ;;  %v706_v11 = vadd.f32 %v704_v3, %v1276_v15  ;;  %v952_v9 = vsel %vm1295_vm14, 1.0, %v1097_v41  ;;  %vm839_vm14 = vcmask (%p490_p5), 41000  }
 0x2c6   : > { %675 = vadd.xlane.f32.xlu1 %v674_v10  ;;  %v645_v12 = vsel %vm1313_vm2, %v643_v2, 0.0  ;;  %v949_v18 = vsel %vm732_vm9, 1.0, %v1097_v41  ;;  %v715_v21 = vsel %vm1307_vm1, %v713_v8, 0.0  ;;  %v770_v25 = vsel %vm646_vm3, %v952_v9, 0.0 }
 0x2c7   : > { %v712_v14 = vpop.xlane.xlu1 %711  ;;  %v648_v17 = vsel %vm646_vm3, %v645_v12, 0.0  ;;  %v738_v26 = vsel %vm646_vm3, %v949_v18, 0.0  ;;  %v717_v27 = vsel %vm646_vm3, %v715_v21, 0.0  ;;  %v771_v32 = vadd.f32 %v770_v25, %v769_v24  ;;  %v751_v12 = vld [vmem:[#allocation2] sm:$0x1] }
 0x2c8   : > { %v714_v19 = vsub.f32 %v706_v11, %v712_v14  ;;  %vm731_vm11 = vcmp.ge.f32.partialorder %v712_v14, %v1276_v15  ;;  %v649_v20 = vadd.f32 %v648_v17, %v647_v16  ;;  %v755_v18 = vld [vmem:[#allocation3] sm:$0x1]  ;;  %v764_v24 = vld [vmem:[#allocation6] sm:$0x1]  ;;  %v784_v25 = vld [vmem:[#allocation7] sm:$0x1] }
 0x2c9   : > { %vm733_vm12 = vmand %vm731_vm11, %vm1301_vm15 }
 0x2ca   : > { %650 = vadd.xlane.f32.xlu0 %v649_v20  ;;  %v950_v22 = vsel %vm733_vm12, 1.0, %v1097_v41  ;;  %v716_v23 = vsel %vm1313_vm2, %v714_v19, 0.0  ;;  %v761_v19 = vld [vmem:[#allocation5] sm:$0x1] }
 0x2cb   : > { %v739_v15 = vsel %vm646_vm3, %v950_v22, 0.0  ;;  %v718_v28 = vsel %vm646_vm3, %v716_v23, 0.0 }
 0x2cc   : > { %v740_v29 = vadd.f32 %v739_v15, %v738_v26  ;;  %v719_v30 = vadd.f32 %v718_v28, %v717_v27 }
 0x2ce   : > { %741 = vadd.xlane.f32.xlu1 %v740_v29  ;;  %720 = vadd.xlane.f32.xlu0 %v719_v30 }
 0x2d2   : > { %792 = vadd.xlane.f32.xlu1 %v1323_v46  ;;  %772 = vadd.xlane.f32.xlu0 %v771_v32 }
 0x353   : > { %v676_v33 = vpop.xlane.xlu1 %675 }
 0x354   : > { %v677_v34 = vrot.slane %v676_v33, 4 }
 0x356   : > { %v678_v35 = vadd.f32 %v677_v34, %v676_v33 }
 0x357   : > { %v651_v36 = vpop.xlane.xlu0 %650 }
 0x358   : > { %v679_v37 = vrot.slane %v678_v35, 2  ;;  %v652_v38 = vrot.slane %v651_v36, 4 }
 0x35a   : > { %v653_v39 = vadd.f32 %v652_v38, %v651_v36  ;;  %v680_v42 = vadd.f32 %v679_v37, %v678_v35  ;;  %v822_v36 = vsub.s32 (%p490_p5), 0, %v1281_v31 }
 0x35b   : > { %v742_v40 = vpop.xlane.xlu1 %741  ;;  %v721_v41 = vpop.xlane.xlu0 %720 }
 0x35c   : > { %v654_v43 = vrot.slane %v653_v39, 2  ;;  %v743_v44 = vrot.slane %v742_v40, 4  ;;  %v722_v45 = vrot.slane %v721_v41, 4  ;;  %v681_v46 = vrot.slane %v680_v42, 1 }
 0x35e   : > { %v744_v47 = vadd.f32 %v743_v44, %v742_v40  ;;  %v723_v48 = vadd.f32 %v722_v45, %v721_v41  ;;  %v655_v49 = vadd.f32 %v654_v43, %v653_v39  ;;  %v682_v62 = vadd.f32 %v681_v46, %v680_v42 }
 0x35f   : > { %v793_v50 = vpop.xlane.xlu1 %792  ;;  %v773_v51 = vpop.xlane.xlu0 %772 }
 0x360   : > { %v745_v52 = vrot.slane %v744_v47, 2  ;;  %v724_v53 = vrot.slane %v723_v48, 2  ;;  %v794_v54 = vrot.slane %v793_v50, 4  ;;  %v774_v55 = vrot.slane %v773_v51, 4 }
 0x361   : > { %v656_v56 = vrot.slane %v655_v49, 1 }
 0x362   : > { %v795_v57 = vadd.f32 %v794_v54, %v793_v50  ;;  %v775_v58 = vadd.f32 %v774_v55, %v773_v51  ;;  %v725_v59 = vadd.f32 %v724_v53, %v723_v48  ;;  %v746_v60 = vadd.f32 %v745_v52, %v744_v47 }
 0x363   : > { %v657_v61 = vadd.f32 %v656_v56, %v655_v49 }
 0x364   : > { %v796_v63 = vrot.slane %v795_v57, 2  ;;  %v776_v0 = vrot.slane %v775_v58, 2  ;;  %v726_v1 = vrot.slane %v725_v59, 1  ;;  %v747_v3 = vrot.slane %v746_v60, 1 }
 0x365   : > { %970 = vpush %v657_v61 }
 0x366   : > { %v797_v4 = vadd.f32 %v796_v63, %v795_v57  ;;  %v777_v5 = vadd.f32 %v776_v0, %v775_v58  ;;  %972 = vpush %v682_v62  ;;  %v727_v6 = vadd.f32 %v726_v1, %v725_v59  ;;  %v748_v7 = vadd.f32 %v747_v3, %v746_v60 }
 0x368   : > { %974 = vpush %v727_v6  ;;  %v778_v2 = vrot.slane %v777_v5, 1  ;;  %v798_v8 = vrot.slane %v797_v4, 1 }
 0x369   : > { %976 = vpush %v748_v7 }
 0x36a   : > { %v779_v10 = vadd.f32 %v778_v2, %v777_v5  ;;  %v799_v11 = vadd.f32 %v798_v8, %v797_v4 }
 0x36c   : > { %978 = vpush %v779_v10 }
 0x36d   : > { %980 = vpush %v799_v11 }
 0x396   : > { %s971_s20 = spop %970 }
 0x397   : > { %v659_v14 = vstv %s971_s20  ;;  %s973_s24 = spop %972 }
 0x398   : > { %v752_v16 = vadd.f32 %v751_v12, %v659_v14  ;;  %v684_v17 = vstv %s973_s24 }
 0x399   : > { %v759_v9 = vadd.f32 %v758_v13, %v684_v17  ;;  %s975_s27 = spop %974 }
 0x39a   : > { %754 = vst.msk [vmem:[#allocation2] sm:$0x1] %vm753_vm10, %v752_v16  ;;  %v729_v20 = vstv %s975_s27  ;;  %s977_s28 = spop %976 }
 0x39b   : > { %760 = vst.msk [vmem:[#allocation4] sm:$0x1] %vm753_vm10, %v759_v9  ;;  %v756_v21 = vadd.f32 %v755_v18, %v729_v20  ;;  %v750_v22 = vstv %s977_s28 }
 0x39c   : > { %v762_v23 = vadd.f32 %v761_v19, %v750_v22  ;;  %805 = sbr.rel (!%p490_p5) target bundleno = 1072 (0x430), region = 76 }
 0x39d   : > { %757 = vst.msk [vmem:[#allocation3] sm:$0x1] %vm753_vm10, %v756_v21  ;;  %s979_s29 = spop %978 }
 0x39e   : > { %763 = vst.msk [vmem:[#allocation5] sm:$0x1] %vm753_vm10, %v762_v23  ;;  %v781_v26 = vstv %s979_s29  ;;  %s981_s30 = spop %980 }
 0x39f   : > { %v782_v15 = vadd.f32 %v781_v26, %v764_v24  ;;  %v801_v27 = vstv %s981_s30 }
 0x3a0   : > { %v802_v28 = vadd.f32 %v801_v27, %v784_v25 }
 0x3a1   : > { %783 = vst.msk [vmem:[#allocation6] sm:$0x1] %vm753_vm10, %v782_v15  ;;  %v812_v32 = vld [vmem:[#allocation2] sm:$0x1] (%p490_p5) }
 0x3a2   : > { %803 = vst.msk [vmem:[#allocation7] sm:$0x1] %vm753_vm10, %v802_v28  ;;  %v817_v34 = vld [vmem:[#allocation4] sm:$0x1] (%p490_p5) }
 0x3a4   : > { %v813_v33 = vld [vmem:[#allocation3] sm:$0x1] }
 0x3a5   : > { %v829_v35 = vld [vmem:[#allocation5] sm:$0x1]  ;;  %v814_v37 = vadd.f32 %v813_v33, %v812_v32 }
 0x3a8   : > { %v809_v29 = vld [vmem:[#allocation6] sm:$0x1] }
 0x3a9   : > { %1046 = vrcp.f32 %v809_v29  ;;  %v806_v30 = vld [vmem:[#allocation7] sm:$0x1] }
 0x3aa   : > { %1048 = vrcp.f32 %v806_v30 }
 0x3b3   : > { %v1047_v38 = vpop.eup %1046 }
 0x3b4   : > { %v818_v39 = vmul.f32 %v1047_v38, %v817_v34  ;;  %v830_v40 = vmul.f32 %v1047_v38, %v829_v35  ;;  %v1049_v41 = vpop.eup %1048 }
 0x3b5   : > { %v815_v43 = vmul.f32 %v1049_v41, %v814_v37 }
 0x3b6   : > { %v823_v42 = vrot.slane %v818_v39, %v822_v36  ;;  %v835_v44 = vrot.slane %v830_v40, %v822_v36 }
 0x3b7   : > { %816 = vst.msk [vmem:[%s1403_s11] sm:$0x1] %vm753_vm10, %v815_v43 }
 0x3b8   : > { %824 = vrot.lane.b32.xlu0 %v823_v42, %s1098_s12 }
 0x3bc   : > { %836 = vrot.lane.b32.xlu0 %v835_v44, %s1099_s15 }
 0x42a   : > { %v825_v45 = vpop.permute.xlu0 %824 }
 0x42b   : > { %828 = vst.msk [vmem:[%s1403_s11] sm:$0x1] %vm827_vm13, %v825_v45 }
 0x42e   : > { %v837_v31 = vpop.permute.xlu0 %836 }
 0x42f   : > { %840 = vst.msk [vmem:[%s1403_s11] sm:$0x1] %vm839_vm14, %v837_v31 }
 0x430 PF: > { %s22_s19 = sadd.s32 1, %s1091_s19   ;;  %s1418_s17 = smov %s1087_s18 }
 0x431   : > { %p19_p3 = scmp.ge.s32.totalorder %s22_s19, 4   ;;  %s1419_s18 = smov %s1421_s21 }
 0x433   :  { %21 = sbr.rel (!%p19_p3) target bundleno = 2 (0x2), region = 109 }
 0x43a   :  { %852 = vsyncpa [#allocation9], 1 }
 0x43b   :  { %854 = vsyncpa [#allocation9 + $0x1], 1 }

</bundles_post_ra>
